<compile_context>
chip_gen: v7x
topology: tpu7x:2x2x1
jax: 0.10.0
libtpu: 0.0.40
codegen_flags: <defaults>
</compile_context>

<pallas_src>
import jax
import jax.numpy as jnp
from jax.experimental import pallas as pl
from jax.experimental.pallas import tpu as pltpu


def _round_up(x, m):
    return ((x + m - 1) // m) * m


def _vmem_capacity_bytes():
    """Per-core VMEM capacity; conservative fallback if the query fails."""
    try:
        info = pltpu.get_tpu_info()
        cap = getattr(info, "vmem_capacity_bytes", None)
        if cap:
            return int(cap)
    except Exception:
        pass
    return 64 * 2**20  # v7x per-TensorCore VMEM (smallest of the targets)


def _ffn_chain_kernel(x_ref, w_ref, b_ref, o_ref, act_ref):
    """Fused feed-forward chain.  Grid = (batch_tiles, n_layers).

    x_ref:   (tm, Din)       input tile at its true width; block index is
                             constant along the layer axis -> one DMA per tile.
    w_ref:   (L, D, D)       VMEM-resident weight stack (constant index_map),
             or (1, D, D)    per-layer streamed slab (fallback path).
    b_ref:   (L, 1, D)       VMEM-resident bias stack (f32).
    o_ref:   (tm, Dout_pad)  output tile; written only on the last layer
                             (output block resident across the layer axis).
    act_ref: (tm, D) f32     VMEM scratch activation, resident across layers.
    """
    layer = pl.program_id(1)
    n_layers = pl.num_programs(1)
    din = x_ref.shape[1]
    d = act_ref.shape[1]
    # Resident weights -> dynamic per-layer index; streamed -> always slot 0.
    w_idx = layer if w_ref.shape[0] > 1 else 0
    b_idx = layer if b_ref.shape[0] > 1 else 0

    # First layer: pull the input tile into the f32 VMEM-resident activation,
    # zero-extending the padded lanes in-kernel (no wrapper pad copy).
    @pl.when(layer == 0)
    def _():
        if din == d:
            act_ref[...] = x_ref[...].astype(act_ref.dtype)
        else:
            act_ref[...] = jnp.zeros_like(act_ref)
            act_ref[:, :din] = x_ref[...].astype(act_ref.dtype)

    # Y = A @ W + b : bf16 operands into the MXU, f32 accumulation, f32 bias.
    a = act_ref[...].astype(w_ref.dtype)
    y = jnp.dot(a, w_ref[w_idx], preferred_element_type=jnp.float32)
    y = y + b_ref[b_idx].astype(jnp.float32)

    # Keep the activation in VMEM (f32) for the next layer ...
    @pl.when(layer < n_layers - 1)
    def _():
        act_ref[...] = y

    # ... and only write back to HBM after the final layer (narrow lanes).
    @pl.when(layer == n_layers - 1)
    def _():
        o_ref[...] = y[:, :o_ref.shape[1]].astype(o_ref.dtype)


def feed_forward_pallas(x, w_stack, b_stack, *, out_dim,
                        compute_dtype=jnp.bfloat16, out_dtype=jnp.float32):
    """Run the fused layer chain.

    x:        [B, Din]  (any float dtype; cast happens in-kernel)
    w_stack:  [L, D, D] zero-padded weights, compute dtype (D multiple of 128)
    b_stack:  [L, 1, D] zero-padded biases, f32
    Returns:  [B, out_dim] in out_dtype.
    """
    B, Din = x.shape
    L, D, _ = w_stack.shape
    Dout_pad = _round_up(out_dim, 128)

    cbytes = jnp.dtype(compute_dtype).itemsize
    xbytes = jnp.dtype(x.dtype).itemsize
    obytes = jnp.dtype(out_dtype).itemsize

    vmem_cap = _vmem_capacity_bytes()
    budget = int(vmem_cap * 0.70)  # headroom for Mosaic internal scratch

    B_pad = _round_up(B, 8)

    def vmem_need(tm, resident):
        w_layers = L if resident else 1
        return (2 * w_layers * D * D * cbytes   # weights (double-buffered)
                + 2 * L * D * 4                 # resident bias stack (f32)
                + 2 * tm * Din * xbytes         # input tile
                + 2 * tm * Dout_pad * obytes    # output tile
                + tm * D * 4)                   # f32 activation scratch

    # Prefer (a) VMEM-resident weights (kills the per-batch-tile re-stream,
    # the dominant HBM cost), then (b) the largest batch tile that fits and
    # does not over-pad the batch.
    tm_candidates = [t for t in (512, 256, 128, 64, 32, 16, 8) if t <= B_pad]
    choice = None
    for resident in (True, False):
        for tm in tm_candidates:
            rows = _round_up(B_pad, tm)
            if (rows - B_pad) * 4 > max(B_pad, 32):  # avoid >~25% row padding
                continue
            if vmem_need(tm, resident) <= budget:
                choice = (resident, tm, rows)
                break
        if choice is not None:
            break
    if choice is None:
        # TODO(synk): K/N-tile the weight slab for very wide layers.
        raise ValueError("FeedForwardBlock layer width too large for the fused "
                         "VMEM-resident/streamed Pallas path")
    resident, tm, B_rows = choice

    # Row-pad the input only when needed (no wrapper-side pad-to-D copy).
    x_in = x if B_rows == B else jnp.zeros((B_rows, Din), x.dtype).at[:B, :].set(x)

    grid = (B_rows // tm, L)

    if resident:
        # Constant block index across the whole grid -> fetched once.
        w_spec = pl.BlockSpec((L, D, D), lambda i, l: (0, 0, 0))
    else:
        # Streamed: one padded [D, D] slab per layer step (double-buffered).
        w_spec = pl.BlockSpec((1, D, D), lambda i, l: (l, 0, 0))
    b_spec = pl.BlockSpec((L, 1, D), lambda i, l: (0, 0, 0))  # tiny: resident

    need = vmem_need(tm, resident)
    vmem_limit = int(min(int(vmem_cap * 0.9), max(32 * 2**20, 2 * need)))

    out_p = pl.pallas_call(
        _ffn_chain_kernel,
        out_shape=jax.ShapeDtypeStruct((B_rows, Dout_pad), out_dtype),
        grid_spec=pltpu.PrefetchScalarGridSpec(
            num_scalar_prefetch=0,
            grid=grid,
            in_specs=[
                # Activation tile: constant block index along the layer axis.
                pl.BlockSpec((tm, Din), lambda i, l: (i, 0)),
                w_spec,
                b_spec,
            ],
            out_specs=pl.BlockSpec((tm, Dout_pad), lambda i, l: (i, 0)),
            scratch_shapes=[pltpu.VMEM((tm, D), jnp.float32)],
        ),
        compiler_params=pltpu.CompilerParams(
            # Batch tiles shard across TensorCores (v7x megacore); the layer
            # axis is a sequential chain over the VMEM-resident activation.
            dimension_semantics=("parallel", "arbitrary"),
            vmem_limit_bytes=vmem_limit,
        ),
    )(x_in, w_stack, b_stack)

    if B_rows != B or Dout_pad != out_dim:
        return out_p[:B, :out_dim]
    return out_p


class FeedForwardBlockPallas:
    """JAX/Pallas port of FeedForwardBlock: a chain of Linear layers."""

    def __init__(self, layer_dims, key, compute_dtype=jnp.bfloat16):
        self.layer_dims = list(layer_dims)
        self.output_size = layer_dims[-1]
        self.compute_dtype = compute_dtype
        n_layers = len(layer_dims) - 1
        keys = jax.random.split(key, 2 * n_layers)

        # Master params in f32, mirroring torch.nn.Linear's default init:
        # U(-1/sqrt(fan_in), 1/sqrt(fan_in)) for both W and b. W is stored as
        # [in_features, out_features] so the kernel computes Y = X @ W + b.
        self.params = []
        for i in range(n_layers):
            size_in, size_out = layer_dims[i], layer_dims[i + 1]
            bound = 1.0 / (size_in ** 0.5)
            w = jax.random.uniform(keys[2 * i], (size_in, size_out),
                                   minval=-bound, maxval=bound, dtype=jnp.float32)
            b = jax.random.uniform(keys[2 * i + 1], (size_out,),
                                   minval=-bound, maxval=bound, dtype=jnp.float32)
            self.params.append((w, b))

        # Lane-dense common width (multiple of 128); zero-pad + stack weights
        # so the fused kernel keeps one [L, D, D] slab VMEM-resident.
        # TODO(synk): per-layer padded slabs for strongly heterogeneous widths.
        self.pad_dim = max(_round_up(d, 128) for d in layer_dims)
        D = self.pad_dim
        w_stack = jnp.zeros((n_layers, D, D), compute_dtype)
        b_stack = jnp.zeros((n_layers, 1, D), jnp.float32)
        for i, (w, b) in enumerate(self.params):
            w_stack = w_stack.at[i, :w.shape[0], :w.shape[1]].set(
                w.astype(compute_dtype))
            b_stack = b_stack.at[i, 0, :b.shape[0]].set(b)
        self.w_stack = w_stack
        self.b_stack = b_stack

    def __call__(self, x):
        return feed_forward_pallas(x, self.w_stack, self.b_stack,
                                   out_dim=self.output_size,
                                   compute_dtype=self.compute_dtype)


def _reference_forward(model, x):
    # Pure-JAX reference with the SAME numerics as the kernel: f32 activations
    # between layers, bf16 operands into the matmul, f32 accumulation + bias.
    dt = model.compute_dtype
    h = x.astype(jnp.float32)
    for (w, b) in model.params:
        h = jnp.dot(h.astype(dt), w.astype(dt),
                    preferred_element_type=jnp.float32) + b
    return h


if __name__ == "__main__":
    key = jax.random.PRNGKey(0)
    k_params, k_x = jax.random.split(key)

    # Small shapes consistent with the module: batch=8, layer_dims=[32, 64, 16]
    layer_dims = [32, 64, 16]
    batch = 8

    model = FeedForwardBlockPallas(layer_dims, k_params)
    x = jax.random.normal(k_x, (batch, layer_dims[0]), dtype=jnp.float32)

    logits = jax.block_until_ready(model(x))

    ref = _reference_forward(model, x)
    assert logits.shape == (batch, layer_dims[-1])
    assert jnp.allclose(logits, ref, atol=1e-3, rtol=1e-3), "mismatch vs reference"

    print("KERNEL_OK")
</pallas_src>

<mosaic_0001>
module attributes {stable_mosaic.version = 11 : i64} {
  func.func @_ffn_chain_kernel(%arg0: i32, %arg1: i32, %arg2: memref<8x32xf32, #tpu.memory_space<vmem>>, %arg3: memref<2x128x128xbf16, #tpu.memory_space<vmem>>, %arg4: memref<2x1x128xf32, #tpu.memory_space<vmem>>, %arg5: memref<8x128xf32, #tpu.memory_space<vmem>>, %arg6: memref<8x128xf32, #tpu.memory_space<vmem>>) attributes {dimension_semantics = [#tpu.dimension_semantics<parallel>, #tpu.dimension_semantics<arbitrary>], iteration_bounds = array<i64: 1, 2>, scalar_prefetch = 0 : i64, scratch_operands = 1 : i64, tpu.core_type = #tpu.core_type<tc>, window_params = [{transform_indices = @transform_0, window_bounds = array<i64: 8, 32>}, {pipeline_mode = #tpu.pipeline_mode<synchronous>, transform_indices = @transform_1, window_bounds = array<i64: 2, 128, 128>}, {pipeline_mode = #tpu.pipeline_mode<synchronous>, transform_indices = @transform_2, window_bounds = array<i64: 2, 1, 128>}, {transform_indices = @transform_3, window_bounds = array<i64: 8, 128>}]} {
    %c0_i32 = arith.constant 0 : i32
    %0 = arith.cmpi eq, %arg1, %c0_i32 : i32
    %1 = arith.extui %0 : i1 to i32
    %c0_i32_0 = arith.constant 0 : i32
    %2 = arith.cmpi ne, %1, %c0_i32_0 : i32
    scf.if %2 {
      %cst_9 = arith.constant 0.000000e+00 : f32
      %20 = vector.broadcast %cst_9 : f32 to vector<8x128xf32>
      %c0_10 = arith.constant 0 : index
      %c0_11 = arith.constant 0 : index
      %21 = vector.load %arg6[%c0_10, %c0_11] : memref<8x128xf32, #tpu.memory_space<vmem>>, vector<8x128xf32>
      tpu.vector_store %arg6[%c0_10, %c0_11], %20 {strides = array<i32>} : memref<8x128xf32, #tpu.memory_space<vmem>>, vector<8x128xf32>,
      %c0_12 = arith.constant 0 : index
      %c0_13 = arith.constant 0 : index
      %22 = vector.load %arg2[%c0_12, %c0_13] : memref<8x32xf32, #tpu.memory_space<vmem>>, vector<8x32xf32>
      %c0_14 = arith.constant 0 : index
      %c0_15 = arith.constant 0 : index
      %23 = vector.load %arg6[%c0_14, %c0_15] : memref<8x128xf32, #tpu.memory_space<vmem>>, vector<8x32xf32>
      tpu.vector_store %arg6[%c0_14, %c0_15], %22 {strides = array<i32>} : memref<8x128xf32, #tpu.memory_space<vmem>>, vector<8x32xf32>,
    } else {
    }
    %c0 = arith.constant 0 : index
    %c0_1 = arith.constant 0 : index
    %3 = vector.load %arg6[%c0, %c0_1] : memref<8x128xf32, #tpu.memory_space<vmem>>, vector<8x128xf32>
    %4 = arith.truncf %3 : vector<8x128xf32> to vector<8x128xbf16>
    %5 = arith.index_cast %arg1 : i32 to index
    %c0_2 = arith.constant 0 : index
    %c0_3 = arith.constant 0 : index
    %6 = vector.load %arg3[%5, %c0_2, %c0_3] : memref<2x128x128xbf16, #tpu.memory_space<vmem>>, vector<1x128x128xbf16>
    %7 = vector.shape_cast %6 : vector<1x128x128xbf16> to vector<128x128xbf16>
    %cst = arith.constant dense<0.000000e+00> : vector<8x128xf32>
    %8 = tpu.matmul %4, %7, %cst {dimension_numbers = #tpu.dot_dimension_numbers<[1], [0], [0], [1], [0, 0, 1, 1], [], []>} : vector<8x128xbf16>, vector<128x128xbf16>, vector<8x128xf32> -> vector<8x128xf32>
    %9 = arith.index_cast %arg1 : i32 to index
    %c0_4 = arith.constant 0 : index
    %c0_5 = arith.constant 0 : index
    %10 = vector.load %arg4[%9, %c0_4, %c0_5] : memref<2x1x128xf32, #tpu.memory_space<vmem>>, vector<1x1x128xf32>
    %11 = vector.shape_cast %10 : vector<1x1x128xf32> to vector<1x128xf32>
    %12 = vector.broadcast %11 : vector<1x128xf32> to vector<8x128xf32>
    %13 = arith.addf %8, %12 : vector<8x128xf32>
    %c1_i32 = arith.constant 1 : i32
    %14 = arith.cmpi slt, %arg1, %c1_i32 : i32
    %15 = arith.extui %14 : i1 to i32
    %c0_i32_6 = arith.constant 0 : i32
    %16 = arith.cmpi ne, %15, %c0_i32_6 : i32
    scf.if %16 {
      %c0_9 = arith.constant 0 : index
      %c0_10 = arith.constant 0 : index
      %20 = vector.load %arg6[%c0_9, %c0_10] : memref<8x128xf32, #tpu.memory_space<vmem>>, vector<8x128xf32>
      tpu.vector_store %arg6[%c0_9, %c0_10], %13 {strides = array<i32>} : memref<8x128xf32, #tpu.memory_space<vmem>>, vector<8x128xf32>,
    } else {
    }
    %c1_i32_7 = arith.constant 1 : i32
    %17 = arith.cmpi eq, %arg1, %c1_i32_7 : i32
    %18 = arith.extui %17 : i1 to i32
    %c0_i32_8 = arith.constant 0 : i32
    %19 = arith.cmpi ne, %18, %c0_i32_8 : i32
    scf.if %19 {
      %c0_9 = arith.constant 0 : index
      %c0_10 = arith.constant 0 : index
      %20 = vector.load %arg5[%c0_9, %c0_10] : memref<8x128xf32, #tpu.memory_space<vmem>>, vector<8x128xf32>
      tpu.vector_store %arg5[%c0_9, %c0_10], %13 {strides = array<i32>} : memref<8x128xf32, #tpu.memory_space<vmem>>, vector<8x128xf32>,
    } else {
    }
    return
  }
  func.func @transform_0(%arg0: i32, %arg1: i32) -> (i32, i32) {
    %c0_i32 = arith.constant 0 : i32
    %c0_i32_0 = arith.constant 0 : i32
    return %arg0, %c0_i32 : i32, i32
  }
  func.func @transform_1(%arg0: i32, %arg1: i32) -> (i32, i32, i32) {
    %c0_i32 = arith.constant 0 : i32
    %c0_i32_0 = arith.constant 0 : i32
    %c0_i32_1 = arith.constant 0 : i32
    %c0_i32_2 = arith.constant 0 : i32
    return %c0_i32, %c0_i32_0, %c0_i32_1 : i32, i32, i32
  }
  func.func @transform_2(%arg0: i32, %arg1: i32) -> (i32, i32, i32) {
    %c0_i32 = arith.constant 0 : i32
    %c0_i32_0 = arith.constant 0 : i32
    %c0_i32_1 = arith.constant 0 : i32
    %c0_i32_2 = arith.constant 0 : i32
    return %c0_i32, %c0_i32_0, %c0_i32_1 : i32, i32, i32
  }
  func.func @transform_3(%arg0: i32, %arg1: i32) -> (i32, i32) {
    %c0_i32 = arith.constant 0 : i32
    %c0_i32_0 = arith.constant 0 : i32
    return %arg0, %c0_i32 : i32, i32
  }
}

</mosaic_0001>

<bundles_post_ra>
// kernel: tpu_custom_call.1
= control target key start
LH: loop header
LB: loop body
LE: loop exit
PB: predicated region body
PF: predicated region fallthrough
CT: control target
= control target key end

     0   :  { %8 = vsyncpa [#allocation4], 0  ;;  %s808_s0 = inlined_call_operand.hbm [shape: f32[8,32], index: 0, kind: input, shape index: {}]   ;;  %s809_s1 = inlined_call_operand.hbm [shape: bf16[2,128,128], index: 1, kind: input, shape index: {}]   ;;  %s810_s2 = inlined_call_operand.vmem [shape: f32[2,1,128], index: 2, kind: input, shape index: {}]   ;;  %s811_s3 = inlined_call_operand.hbm [shape: f32[8,128], index: 3, kind: output, shape index: {}]  }
   0x1   :  { %9 = vsyncpa [#allocation7], 0 }
   0x2   :  { %10 = vsyncpa [#allocation5], 0  ;;  %s665_s12 = smov 0   ;;  %s667_s13 = smov 0  }
   0x3   :  { %s669_s14 = smov 0  }
   0x4 LB: > { %s399_s15 = sadd.s32 4294967295, %s635_s14   ;;  %s25_s16 = sadd.s32 1, %s631_s13  ;;  %s635_s14 = sphi %s669_s14, %s16_s14   ;;  %s631_s13 = sphi %s667_s13, %s822_s13   ;;  %s627_s12 = sphi %s665_s12, %s821_s12  }
   0x5   : > { %p26_p0 = scmp.ge.s32.totalorder %s25_s16, 2  ;;  %p400_p1 = scmp.ge.s32.totalorder %s635_s14, 1 }
   0x6   : > { %p127_p2 = scmp.lt.s32.totalorder %s635_s14, 3  ;;  %p692_p4 = scmp.eq.s32.totalorder %s399_s15, 0 }
   0x7   : > { %s824_s16 = smov (%p26_p0, %s25_s16), 0  ;;  %s637_s19 = smov [#allocation3]  }
   0x8   : > { %p686_p3 = pnand %p400_p1, %p127_p2  ;;  %s142_s20 = sshll.u32 %s637_s19, 4  ;;  %s143_s20 = int_to_ptr.vmem [resolvable:$true] %s142_s20 }
   0x9   : > { %s816_s18 = scalar_select %p692_p4, 1, 0 }
   0xa   : > { %s815_s17 = scalar_select %p686_p3, 1, 0 }
   0xb   : > { %p466_p5 = pneg %p686_p3  ;;  %s638_s21 = smov [#allocation6]  }
   0xc   : > { %s152_s22 = sshll.u32 %s638_s21, 4  ;;  %s519_s26 = scalar_lea.hbm %s808_s0, 128  ;;  %s704_s22 = int_to_ptr.vmem [resolvable:$true] %s152_s22 }
   0xd   : > { %p700_p6 = pnand %p692_p4, %p466_p5  ;;  %p520_p7 = scmp.ne.s32.totalorder %s808_s0, %s519_s26 }
   0xe   : > { %p526_p11 = scmp.lt.u32.totalorder %s519_s26, %s808_s0 }
   0xf   : > { %p521_p8 = pneg %p700_p6 }
  0x11   : > { %p522_p9 = pnand %p521_p8, %p520_p7 }
  0x13   : > { %p523_p10 = pneg %p522_p9 }
  0x15   : > { %p528_p12 = pnand %p526_p11, %p523_p10 }
  0x17   : > { %531 = shalt.err (!%p528_p12)
}
  0x18   : > { %s532_s4 = scalar_lea.vmem %s143_s20, 128  ;;  %p540_p2 = scmp.lt.s32.totalorder %s143_s20, %s143_s20 }
  0x19   : > { %p533_p13 = scmp.ne.s32.totalorder %s143_s20, %s532_s4  ;;  %p541_p5 = scmp.lt.s32.totalorder %s532_s4, %s532_s4 }
  0x1b   : > { %p535_p0 = pnand %p533_p13, %p521_p8  ;;  %p542_p4 = por %p541_p5, %p540_p2 }
  0x1d   : > { %p536_p1 = pneg %p535_p0 }
  0x1f   : > { %p543_p3 = pnand %p542_p4, %p536_p1 }
  0x21   : > { %546 = shalt.err (!%p543_p3)
}
  0x22   : > { %469 = dma.hbm_to_vmem [thread:$0]  (!%p700_p6), %s808_s0, 128, %s143_s20, [#allocation4]  }
  0x23   : > { %s547_s9 = scalar_lea.hbm %s809_s1, 2048 }
  0x24   : > { %p548_p7 = scmp.ne.s32.totalorder %s809_s1, %s547_s9  ;;  %p554_p3 = scmp.lt.u32.totalorder %s547_s9, %s809_s1 }
  0x26   : > { %p550_p9 = pnand %p548_p7, %p521_p8 }
  0x28   : > { %p551_p4 = pneg %p550_p9 }
  0x2a   : > { %p556_p10 = pnand %p554_p3, %p551_p4 }
  0x2c   : > { %559 = shalt.err (!%p556_p10)
}
  0x2d   : > { %s560_s20 = scalar_lea.vmem %s704_s22, 2048  ;;  %p568_p0 = scmp.lt.s32.totalorder %s704_s22, %s704_s22 }
  0x2e   : > { %p561_p11 = scmp.ne.s32.totalorder %s704_s22, %s560_s20  ;;  %p569_p1 = scmp.lt.s32.totalorder %s560_s20, %s560_s20 }
  0x30   : > { %p563_p12 = pnand %p561_p11, %p521_p8  ;;  %p570_p2 = por %p569_p1, %p568_p0 }
  0x32   : > { %p564_p13 = pneg %p563_p12 }
  0x34   : > { %p571_p5 = pnand %p570_p2, %p564_p13 }
  0x36   : > { %574 = shalt.err (!%p571_p5)
}
  0x37   : > { %s639_s24 = smov 64   ;;  %s640_s25 = smov 4  }
  0x38   : > { %472 = dma.hbm_to_vmem [thread:$0]  (!%p700_p6), %s809_s1, 2048, %s704_s22, [#allocation7], %s639_s24, %s639_s24, %s640_s25  }
  0x39   : > { %p818_p7 = scmp.ne.s32.totalorder %s815_s17, 0 }
  0x3a   : > { %p819_p8 = scmp.ne.s32.totalorder (!%p818_p7), %s816_s18, 0 }
  0x3b   : > { %171 = sbr.rel (%p818_p7) target bundleno = 361 (0x169), region = 32 }
  0x42   : > { %614 = dma.done.wait (%p819_p8), [#allocation4], 128  }
  0x43   : > { %616 = vsyncadd (%p819_p8), [#allocation4], 4294967168 }
  0x44   : > { %618 = dma.done.wait (%p819_p8), [#allocation7], 2048  }
  0x45   : > { %620 = vsyncadd (%p819_p8), [#allocation7], 4294965248  ;;  %p406_p9 = scmp.ne.s32.totalorder %s627_s12, 0 }
  0x46   : > { %v195_v0 = vld [vmem:[#allocation3] sm:$0xff] (!%p406_p9)  ;;  %vm196_vm0 = vcmask (!%p406_p9), 261120   ;;  %v641_v1 = vmov (!%p406_p9), 0.0  }
  0x47   : > { %193 = sbr.rel (%p406_p9) target bundleno = 78 (0x4e), region = 44  ;;  %194 = vst [vmem:[#allocation2] sm:$0xff] (!%p406_p9), %v641_v1 }
  0x48   : > { %197 = vst.msk [vmem:[#allocation2] sm:$0xff] (!%p406_p9), %vm196_vm0, %v195_v0 }
  0x4e PF: > { %s424_s17 = sshll.u32 %s627_s12, 6  ;;  %v642_v2 = vmov 0.0   ;;  %vm643_vm1 = vmmov 0   ;;  %s219_s28 = scalar_lea.vmem %s810_s2, %s627_s12 }
  0x4f   : > { %434 = vmatprep.subr.bf16.mxu0 %v642_v2  ;;  %450 = vmatprep.mubr.msk.bf16.mxu0 %vm643_vm1, %v642_v2  ;;  %s202_s22 = scalar_lea.vmem [#allocation6], %s424_s17  ;;  %v198_v11 = vld [vmem:[#allocation2] sm:$0xff]  ;;  %p418_p6 = scmp.ge.s32.totalorder %s627_s12, 1 }
  0x50   : > { %v511_v3 = vld [vmem:[%s202_s22] sm:$0xff]   ;;  %v512_v4 = vld [vmem:[%s202_s22 + $0x8] sm:$0xff]   ;;  %v513_v5 = vld [vmem:[%s202_s22 + $0x10] sm:$0xff]   ;;  %v199_v12 = vpack.c.bf16 %v198_v11, %v198_v11 }
  0x51   : > { %435 = vmatpush3.bf16.msra.mxu0 %v511_v3  ;;  %v514_v6 = vld [vmem:[%s202_s22 + $0x18] sm:$0xff]   ;;  %v515_v7 = vld [vmem:[%s202_s22 + $0x20] sm:$0xff]   ;;  %v516_v8 = vld [vmem:[%s202_s22 + $0x28] sm:$0xff]  }
  0x52   : > { %436 = vmatprep.subr.bf16.mxu0 %v642_v2  ;;  %v517_v9 = vld [vmem:[%s202_s22 + $0x30] sm:$0xff]   ;;  %v518_v10 = vld [vmem:[%s202_s22 + $0x38] sm:$0xff]   ;;  %v409_v13 = vld [vmem:[%s219_s28] ss:$0 sm:$0xff] }
  0x55   : > { %437 = vmatpush3.bf16.msra.mxu0 %v512_v4 }
  0x56   : > { %438 = vmatprep.subr.bf16.mxu0 %v642_v2 }
  0x59   : > { %439 = vmatpush3.bf16.msra.mxu0 %v513_v5 }
  0x5a   : > { %440 = vmatprep.subr.bf16.mxu0 %v642_v2 }
  0x5d   : > { %441 = vmatpush3.bf16.msra.mxu0 %v514_v6 }
  0x5e   : > { %442 = vmatprep.subr.bf16.mxu0 %v642_v2 }
  0x61   : > { %443 = vmatpush3.bf16.msra.mxu0 %v515_v7 }
  0x62   : > { %444 = vmatprep.subr.bf16.mxu0 %v642_v2 }
  0x65   : > { %445 = vmatpush3.bf16.msra.mxu0 %v516_v8 }
  0x66   : > { %446 = vmatprep.subr.bf16.mxu0 %v642_v2 }
  0x69   : > { %447 = vmatpush3.bf16.msra.mxu0 %v517_v9 }
  0x6a   : > { %448 = vmatprep.subr.bf16.mxu0 %v642_v2 }
  0x6d   : > { %449 = vmatpush3.bf16.msra.mxu0 %v518_v10 }
  0x70   : > { %451 = vmatmul.mubr.bf16.vlgmr.msra.gmra.mrb[0].mxu0 %v199_v12 }
 0x140   : > { %318 = sbr.rel (%p418_p6) target bundleno = 327 (0x147), region = 48 }
 0x143   : > { %v309_v14 = vpop.f32.mrb[0].mxu0 }
 0x144   : > { %v310_v15 = vadd.f32 %v409_v13, %v309_v14  ;;  %v452_v16 = vpop.f32.mrb[1].mxu0 }
 0x145   : > { %v312_v17 = vpop.f32.mrb[2].mxu0 }
 0x146   : > { %v453_v18 = vpop.f32.mrb[3].mxu0  ;;  %319 = vst [vmem:[#allocation2] sm:$0xff] (!%p418_p6), %v310_v15 }
 0x147 PF: > { %p419_p4 = scmp.ne.s32.totalorder %s627_s12, 1 }
 0x148   : > { %324 = vst [vmem:[#allocation8] sm:$0xff] (!%p419_p4), %v310_v15 }
 0x149   : > { %323 = sbr.rel (%p419_p4) target bundleno = 336 (0x150), region = 52 }
 0x150 PF: > { %p773_p3 = scmp.eq.s32.totalorder %s399_s15, 1  ;;  %s644_s30 = smov [#allocation8]  }
 0x151   : > { %s334_s4 = sshll.u32 %s644_s30, 4  ;;  %s335_s4 = int_to_ptr.vmem [resolvable:$true] %s334_s4 }
 0x152   : > { %s575_s5 = scalar_lea.vmem %s335_s4, 128  ;;  %p582_p13 = scmp.lt.s32.totalorder %s335_s4, %s335_s4 }
 0x153   : > { %p576_p10 = scmp.ne.s32.totalorder %s335_s4, %s575_s5  ;;  %p583_p0 = scmp.lt.s32.totalorder %s575_s5, %s575_s5 }
 0x155   : > { %p577_p11 = pnand %p576_p10, %p773_p3  ;;  %p584_p1 = por %p583_p0, %p582_p13 }
 0x157   : > { %p578_p12 = pneg %p577_p11 }
 0x159   : > { %p585_p2 = pnand %p584_p1, %p578_p12 }
 0x15b   : > { %588 = shalt.err (!%p585_p2)
}
 0x15c   : > { %s589_s15 = scalar_lea.hbm %s811_s3, 128 }
 0x15d   : > { %p590_p5 = scmp.ne.s32.totalorder %s811_s3, %s589_s15  ;;  %p595_p9 = scmp.lt.u32.totalorder %s589_s15, %s811_s3 }
 0x15f   : > { %p591_p7 = pnand %p590_p5, %p773_p3 }
 0x161   : > { %p592_p8 = pneg %p591_p7 }
 0x163   : > { %p597_p6 = pnand %p595_p9, %p592_p8 }
 0x165   : > { %600 = shalt.err (!%p597_p6)
}
 0x166   : > { %463 = dma.vmem_to_hbm [thread:$0]  (%p773_p3), %s335_s4, 128, %s811_s3, [#allocation5]  }
 0x167   : > { %622 = dma.done.wait (%p773_p3), [#allocation5], 128  }
 0x168   : > { %624 = vsyncadd (%p773_p3), [#allocation5], 4294967168 }
 0x169 PF: > { %s16_s14 = sadd.s32 1, %s635_s14   ;;  %s821_s12 = smov %s631_s13 }
 0x16a   : > { %p13_p4 = scmp.ge.s32.totalorder %s16_s14, 4   ;;  %s822_s13 = smov %s824_s16 }
 0x16c   :  { %15 = sbr.rel (!%p13_p4) target bundleno = 4 (0x4), region = 81 }
 0x173   :  { %347 = vsyncpa [#allocation4], 1 }
 0x174   :  { %349 = vsyncpa [#allocation4 + $0x1], 1 }
 0x175   :  { %350 = vsyncpa [#allocation7], 1 }
 0x176   :  { %351 = vsyncpa [#allocation5], 1 }
 0x177   :  { %353 = vsyncpa [#allocation5 + $0x1], 1 }

</bundles_post_ra>
